<compile_context>
chip_gen: v7x
topology: tpu7x:2x2x1
jax: 0.10.0
libtpu: 0.0.40
codegen_flags: <defaults>
</compile_context>

<pallas_src>
import functools

import jax
import jax.numpy as jnp
import numpy as np
from jax.experimental import pallas as pl
from jax.experimental.pallas import tpu as pltpu


def _round_up(x, m):
    return (x + m - 1) // m * m


def _slab_layout(in_dim, hidden_dim, out_dim):
    """Row offsets of each parameter section inside the packed weight slab.

    Every section starts on an 8-row (sublane-tile) boundary so the one-time
    in-kernel section loads are tile-aligned.
    """
    o_wi = 0
    o_wh = o_wi + _round_up(in_dim, 8)
    o_b = o_wh + _round_up(hidden_dim, 8)
    o_wo = o_b + 8  # the 3 bias rows live together in one 8-row tile
    rows = o_wo + _round_up(hidden_dim, 8)
    lanes = _round_up(max(3 * hidden_dim, out_dim, 128), 128)
    return o_wi, o_wh, o_b, o_wo, rows, lanes


def pack_params(params):
    """ONE-TIME prep: fuse GRU gate weights/biases and pack every parameter of
    the module into a single lane-aligned f32 slab (one weight DMA per call).

    PyTorch layouts: weight_ih_l0 (3H, D), weight_hh_l0 (3H, H),
    bias_ih_l0 (3H,), bias_hh_l0 (3H,) -- gate order [r | z | n];
    output_proj.weight (Dout, H), output_proj.bias (Dout,).
    """
    w_ih = np.asarray(params["weight_ih"], np.float32)
    w_hh = np.asarray(params["weight_hh"], np.float32)
    b_ih = np.asarray(params["bias_ih"], np.float32)
    b_hh = np.asarray(params["bias_hh"], np.float32)
    w_out = np.asarray(params["w_out"], np.float32)
    b_out = np.asarray(params["b_out"], np.float32)

    H = w_hh.shape[1]
    D = w_ih.shape[1]
    Dout = w_out.shape[0]
    G = 3 * H
    o_wi, o_wh, o_b, o_wo, rows, lanes = _slab_layout(D, H, Dout)

    slab = np.zeros((rows, lanes), np.float32)
    slab[o_wi:o_wi + D, :G] = w_ih.T              # [W_ir | W_iz | W_in]  (D, 3H)
    slab[o_wh:o_wh + H, :G] = w_hh.T              # [W_hr | W_hz | W_hn]  (H, 3H)
    b_i = b_ih.copy()
    b_i[:2 * H] += b_hh[:2 * H]                   # fold b_hr/b_hz into b_ir/b_iz
    slab[o_b, :G] = b_i                           # [b_ir+b_hr | b_iz+b_hz | b_in]
    slab[o_b + 1, 2 * H:G] = b_hh[2 * H:]         # b_hn, pre-positioned at n-gate lanes
    slab[o_b + 2, :Dout] = b_out
    slab[o_wo:o_wo + H, :Dout] = w_out.T          # Linear weight, transposed (H, Dout)
    return jnp.asarray(slab)


def gru_predict_kernel(x_ref, w_ref, o_ref, *, B, K, D, H):
    """GRU over K steps (h0 = 0) + output projection, fully resident in VMEM."""
    G = 3 * H
    Dout = o_ref.shape[1]
    o_wi, o_wh, o_b, o_wo, _, _ = _slab_layout(D, H, Dout)

    # One-time, tile-aligned section loads from the packed slab.
    w_i = w_ref[o_wi:o_wi + D, :]        # (D, LANE)  [r | z | n] columns
    w_h = w_ref[o_wh:o_wh + H, :]        # (H, LANE)
    b_i = w_ref[o_b:o_b + 1, :]          # (1, LANE)  b_ir+b_hr | b_iz+b_hz | b_in
    b_hn = w_ref[o_b + 1:o_b + 2, :]     # (1, LANE)  b_hn at lanes [2H, 3H)
    b_out = w_ref[o_b + 2:o_b + 3, :]    # (1, LANE)
    w_out = w_ref[o_wo:o_wo + H, :]      # (H, LANE)

    x2d = x_ref[...]                     # (B, K*D): row b = [x[b,0,:] ... x[b,K-1,:]]
    lanes = w_i.shape[1]

    # Hoisted broadcasts (JAX does not CSE broadcast_in_dim across the unroll).
    b_i_b = jnp.broadcast_to(b_i, (B, lanes))
    b_hn_b = jnp.broadcast_to(b_hn, (B, lanes))

    # Input projection for every step, off the recurrence's serial chain
    # (independent of h -> overlaps the h-matmul/EUP chain on the MXU).
    xw = [
        jnp.dot(x2d[:, t * D:(t + 1) * D], w_i, preferred_element_type=jnp.float32)
        + b_i_b
        for t in range(K)
    ]

    # PyTorch GRU cell (gate order r, z, n):
    #   r  = sigmoid(W_ir x + b_ir + W_hr h + b_hr)
    #   z  = sigmoid(W_iz x + b_iz + W_hz h + b_hz)
    #   n  = tanh   (W_in x + b_in + r * (W_hn h + b_hn))
    #   h' = (1 - z) * n + z * h     (written as n + z * (h - n))
    #
    # t = 0: h == 0, so the h @ W_h matmul is skipped entirely.
    s0 = jax.nn.sigmoid(xw[0])                                  # one fused EUP call
    r = s0[:, :H]
    z = s0[:, H:2 * H]
    n = jnp.tanh(xw[0][:, 2 * H:G] + r * b_hn_b[:, 2 * H:G])
    h = n - z * n

    for t in range(1, K):                # K tiny & static -> fully unrolled
        gh = jnp.dot(h, w_h, preferred_element_type=jnp.float32) + b_hn_b  # (B, LANE)
        s = jax.nn.sigmoid(xw[t] + gh)   # r and z in a single EUP call
        r = s[:, :H]
        z = s[:, H:2 * H]
        n = jnp.tanh(xw[t][:, 2 * H:G] + r * gh[:, 2 * H:G])
        h = n + z * (h - n)

    # Fused output projection; store directly at (B, Dout) so the wrapper needs
    # no post-slice op.
    out = jnp.dot(h, w_out, preferred_element_type=jnp.float32) + b_out
    o_ref[...] = out[:, :Dout]


def self_model_core_forward(x, param_slab, *, hidden_dim):
    """x: (B, K, D) float32 with D = state_dim + chem_dim. Returns (B, D)."""
    B, K, D = x.shape
    x2d = x.reshape(B, K * D)            # contiguous view -> bitcast, no transpose/copy
    vmem = pl.BlockSpec(memory_space=pltpu.MemorySpace.VMEM)
    return pl.pallas_call(
        functools.partial(gru_predict_kernel, B=B, K=K, D=D, H=hidden_dim),
        out_shape=jax.ShapeDtypeStruct((B, D), jnp.float32),
        in_specs=[vmem, vmem],
        out_specs=vmem,
    )(x2d, param_slab)


def init_params(key, state_dim, chem_dim, hidden_dim):
    """PyTorch-layout parameters (nn.GRU + nn.Linear shapes)."""
    D = state_dim + chem_dim
    H = hidden_dim
    ks = jax.random.split(key, 6)
    bound = 1.0 / (H ** 0.5)
    u = lambda k, shape: jax.random.uniform(k, shape, jnp.float32, -bound, bound)
    return {
        "weight_ih": u(ks[0], (3 * H, D)),
        "weight_hh": u(ks[1], (3 * H, H)),
        "bias_ih": u(ks[2], (3 * H,)),
        "bias_hh": u(ks[3], (3 * H,)),
        "w_out": u(ks[4], (D, H)),
        "b_out": u(ks[5], (D,)),
    }


def reference_forward(x, p):
    """Plain-JAX reference with PyTorch GRU/Linear semantics (correctness check)."""
    B, K, D = x.shape
    H = p["weight_hh"].shape[1]
    w_i = p["weight_ih"].T
    w_h = p["weight_hh"].T

    def step(h, xt):
        gi = xt @ w_i + p["bias_ih"]
        gh = h @ w_h + p["bias_hh"]
        r = jax.nn.sigmoid(gi[:, :H] + gh[:, :H])
        z = jax.nn.sigmoid(gi[:, H:2 * H] + gh[:, H:2 * H])
        n = jnp.tanh(gi[:, 2 * H:] + r * gh[:, 2 * H:])
        return (1.0 - z) * n + z * h, None

    h0 = jnp.zeros((B, H), jnp.float32)
    h_last, _ = jax.lax.scan(step, h0, jnp.transpose(x, (1, 0, 2)))
    return h_last @ p["w_out"].T + p["b_out"]


if __name__ == "__main__":
    state_dim, chem_dim, hidden_dim = 4, 4, 32
    B, K = 2, 8
    D = state_dim + chem_dim

    key = jax.random.PRNGKey(0)
    k_x, k_p = jax.random.split(key)
    x = jax.random.normal(k_x, (B, K, D), jnp.float32)
    params = init_params(k_p, state_dim, chem_dim, hidden_dim)

    # One-time prep (hoisted out of the per-call path).
    param_slab = jax.device_put(pack_params(params))

    fwd = jax.jit(self_model_core_forward, static_argnames="hidden_dim")
    out = jax.block_until_ready(fwd(x, param_slab, hidden_dim=hidden_dim))
    ref = reference_forward(x, params)

    assert out.shape == (B, D)
    err = float(jnp.max(jnp.abs(out - ref)))
    assert jnp.allclose(out, ref, atol=1e-5, rtol=1e-5), f"max abs err {err}"
    print("KERNEL_OK")
</pallas_src>

<mosaic_0001>
module attributes {stable_mosaic.version = 11 : i64} {
  func.func @gru_predict_kernel(%arg0: memref<2x64xf32, #tpu.memory_space<vmem>>, %arg1: memref<80x128xf32, #tpu.memory_space<vmem>>, %arg2: memref<2x8xf32, #tpu.memory_space<vmem>>) attributes {dimension_semantics = [], scalar_prefetch = 0 : i64, scratch_operands = 0 : i64, tpu.core_type = #tpu.core_type<tc>} {
    %c0 = arith.constant 0 : index
    %c0_0 = arith.constant 0 : index
    %0 = vector.load %arg1[%c0, %c0_0] : memref<80x128xf32, #tpu.memory_space<vmem>>, vector<8x128xf32>
    %c8 = arith.constant 8 : index
    %c0_1 = arith.constant 0 : index
    %1 = vector.load %arg1[%c8, %c0_1] : memref<80x128xf32, #tpu.memory_space<vmem>>, vector<32x128xf32>
    %c40 = arith.constant 40 : index
    %c0_2 = arith.constant 0 : index
    %2 = vector.load %arg1[%c40, %c0_2] : memref<80x128xf32, #tpu.memory_space<vmem>>, vector<1x128xf32>
    %c41 = arith.constant 41 : index
    %c0_3 = arith.constant 0 : index
    %3 = vector.load %arg1[%c41, %c0_3] : memref<80x128xf32, #tpu.memory_space<vmem>>, vector<1x128xf32>
    %c42 = arith.constant 42 : index
    %c0_4 = arith.constant 0 : index
    %4 = vector.load %arg1[%c42, %c0_4] : memref<80x128xf32, #tpu.memory_space<vmem>>, vector<1x128xf32>
    %c48 = arith.constant 48 : index
    %c0_5 = arith.constant 0 : index
    %5 = vector.load %arg1[%c48, %c0_5] : memref<80x128xf32, #tpu.memory_space<vmem>>, vector<32x128xf32>
    %c0_6 = arith.constant 0 : index
    %c0_7 = arith.constant 0 : index
    %6 = vector.load %arg0[%c0_6, %c0_7] : memref<2x64xf32, #tpu.memory_space<vmem>>, vector<2x64xf32>
    %7 = vector.shape_cast %2 : vector<1x128xf32> to vector<1x128xf32>
    %8 = vector.broadcast %7 : vector<1x128xf32> to vector<2x128xf32>
    %9 = vector.shape_cast %3 : vector<1x128xf32> to vector<1x128xf32>
    %10 = vector.broadcast %9 : vector<1x128xf32> to vector<2x128xf32>
    %11 = vector.extract_strided_slice %6 {offsets = [0, 0], sizes = [2, 8], strides = [1, 1]} : vector<2x64xf32> to vector<2x8xf32>
    %cst = arith.constant dense<0.000000e+00> : vector<2x128xf32>
    %12 = tpu.matmul %11, %0, %cst {dimension_numbers = #tpu.dot_dimension_numbers<[1], [0], [0], [1], [0, 0, 1, 1], [], []>} : vector<2x8xf32>, vector<8x128xf32>, vector<2x128xf32> -> vector<2x128xf32>
    %13 = arith.addf %12, %8 : vector<2x128xf32>
    %14 = vector.extract_strided_slice %6 {offsets = [0, 8], sizes = [2, 8], strides = [1, 1]} : vector<2x64xf32> to vector<2x8xf32>
    %cst_8 = arith.constant dense<0.000000e+00> : vector<2x128xf32>
    %15 = tpu.matmul %14, %0, %cst_8 {dimension_numbers = #tpu.dot_dimension_numbers<[1], [0], [0], [1], [0, 0, 1, 1], [], []>} : vector<2x8xf32>, vector<8x128xf32>, vector<2x128xf32> -> vector<2x128xf32>
    %16 = arith.addf %15, %8 : vector<2x128xf32>
    %17 = vector.extract_strided_slice %6 {offsets = [0, 16], sizes = [2, 8], strides = [1, 1]} : vector<2x64xf32> to vector<2x8xf32>
    %cst_9 = arith.constant dense<0.000000e+00> : vector<2x128xf32>
    %18 = tpu.matmul %17, %0, %cst_9 {dimension_numbers = #tpu.dot_dimension_numbers<[1], [0], [0], [1], [0, 0, 1, 1], [], []>} : vector<2x8xf32>, vector<8x128xf32>, vector<2x128xf32> -> vector<2x128xf32>
    %19 = arith.addf %18, %8 : vector<2x128xf32>
    %20 = vector.extract_strided_slice %6 {offsets = [0, 24], sizes = [2, 8], strides = [1, 1]} : vector<2x64xf32> to vector<2x8xf32>
    %cst_10 = arith.constant dense<0.000000e+00> : vector<2x128xf32>
    %21 = tpu.matmul %20, %0, %cst_10 {dimension_numbers = #tpu.dot_dimension_numbers<[1], [0], [0], [1], [0, 0, 1, 1], [], []>} : vector<2x8xf32>, vector<8x128xf32>, vector<2x128xf32> -> vector<2x128xf32>
    %22 = arith.addf %21, %8 : vector<2x128xf32>
    %23 = vector.extract_strided_slice %6 {offsets = [0, 32], sizes = [2, 8], strides = [1, 1]} : vector<2x64xf32> to vector<2x8xf32>
    %cst_11 = arith.constant dense<0.000000e+00> : vector<2x128xf32>
    %24 = tpu.matmul %23, %0, %cst_11 {dimension_numbers = #tpu.dot_dimension_numbers<[1], [0], [0], [1], [0, 0, 1, 1], [], []>} : vector<2x8xf32>, vector<8x128xf32>, vector<2x128xf32> -> vector<2x128xf32>
    %25 = arith.addf %24, %8 : vector<2x128xf32>
    %26 = vector.extract_strided_slice %6 {offsets = [0, 40], sizes = [2, 8], strides = [1, 1]} : vector<2x64xf32> to vector<2x8xf32>
    %cst_12 = arith.constant dense<0.000000e+00> : vector<2x128xf32>
    %27 = tpu.matmul %26, %0, %cst_12 {dimension_numbers = #tpu.dot_dimension_numbers<[1], [0], [0], [1], [0, 0, 1, 1], [], []>} : vector<2x8xf32>, vector<8x128xf32>, vector<2x128xf32> -> vector<2x128xf32>
    %28 = arith.addf %27, %8 : vector<2x128xf32>
    %29 = vector.extract_strided_slice %6 {offsets = [0, 48], sizes = [2, 8], strides = [1, 1]} : vector<2x64xf32> to vector<2x8xf32>
    %cst_13 = arith.constant dense<0.000000e+00> : vector<2x128xf32>
    %30 = tpu.matmul %29, %0, %cst_13 {dimension_numbers = #tpu.dot_dimension_numbers<[1], [0], [0], [1], [0, 0, 1, 1], [], []>} : vector<2x8xf32>, vector<8x128xf32>, vector<2x128xf32> -> vector<2x128xf32>
    %31 = arith.addf %30, %8 : vector<2x128xf32>
    %32 = vector.extract_strided_slice %6 {offsets = [0, 56], sizes = [2, 8], strides = [1, 1]} : vector<2x64xf32> to vector<2x8xf32>
    %cst_14 = arith.constant dense<0.000000e+00> : vector<2x128xf32>
    %33 = tpu.matmul %32, %0, %cst_14 {dimension_numbers = #tpu.dot_dimension_numbers<[1], [0], [0], [1], [0, 0, 1, 1], [], []>} : vector<2x8xf32>, vector<8x128xf32>, vector<2x128xf32> -> vector<2x128xf32>
    %34 = arith.addf %33, %8 : vector<2x128xf32>
    %35 = arith.negf %13 : vector<2x128xf32>
    %36 = math.exp %35 : vector<2x128xf32>
    %cst_15 = arith.constant 1.000000e+00 : f32
    %37 = vector.broadcast %cst_15 : f32 to vector<2x128xf32>
    %38 = arith.addf %37, %36 : vector<2x128xf32>
    %39 = arith.divf %37, %38 : vector<2x128xf32>
    %40 = vector.extract_strided_slice %39 {offsets = [0, 0], sizes = [2, 32], strides = [1, 1]} : vector<2x128xf32> to vector<2x32xf32>
    %41 = vector.extract_strided_slice %39 {offsets = [0, 32], sizes = [2, 32], strides = [1, 1]} : vector<2x128xf32> to vector<2x32xf32>
    %42 = vector.extract_strided_slice %13 {offsets = [0, 64], sizes = [2, 32], strides = [1, 1]} : vector<2x128xf32> to vector<2x32xf32>
    %43 = vector.extract_strided_slice %10 {offsets = [0, 64], sizes = [2, 32], strides = [1, 1]} : vector<2x128xf32> to vector<2x32xf32>
    %44 = arith.mulf %40, %43 : vector<2x32xf32>
    %45 = arith.addf %42, %44 : vector<2x32xf32>
    %46 = math.tanh %45 : vector<2x32xf32>
    %47 = arith.mulf %41, %46 : vector<2x32xf32>
    %48 = arith.subf %46, %47 : vector<2x32xf32>
    %cst_16 = arith.constant dense<0.000000e+00> : vector<2x128xf32>
    %49 = tpu.matmul %48, %1, %cst_16 {dimension_numbers = #tpu.dot_dimension_numbers<[1], [0], [0], [1], [0, 0, 1, 1], [], []>} : vector<2x32xf32>, vector<32x128xf32>, vector<2x128xf32> -> vector<2x128xf32>
    %50 = arith.addf %49, %10 : vector<2x128xf32>
    %51 = arith.addf %16, %50 : vector<2x128xf32>
    %52 = arith.negf %51 : vector<2x128xf32>
    %53 = math.exp %52 : vector<2x128xf32>
    %cst_17 = arith.constant 1.000000e+00 : f32
    %54 = vector.broadcast %cst_17 : f32 to vector<2x128xf32>
    %55 = arith.addf %54, %53 : vector<2x128xf32>
    %56 = arith.divf %54, %55 : vector<2x128xf32>
    %57 = vector.extract_strided_slice %56 {offsets = [0, 0], sizes = [2, 32], strides = [1, 1]} : vector<2x128xf32> to vector<2x32xf32>
    %58 = vector.extract_strided_slice %56 {offsets = [0, 32], sizes = [2, 32], strides = [1, 1]} : vector<2x128xf32> to vector<2x32xf32>
    %59 = vector.extract_strided_slice %16 {offsets = [0, 64], sizes = [2, 32], strides = [1, 1]} : vector<2x128xf32> to vector<2x32xf32>
    %60 = vector.extract_strided_slice %50 {offsets = [0, 64], sizes = [2, 32], strides = [1, 1]} : vector<2x128xf32> to vector<2x32xf32>
    %61 = arith.mulf %57, %60 : vector<2x32xf32>
    %62 = arith.addf %59, %61 : vector<2x32xf32>
    %63 = math.tanh %62 : vector<2x32xf32>
    %64 = arith.subf %48, %63 : vector<2x32xf32>
    %65 = arith.mulf %58, %64 : vector<2x32xf32>
    %66 = arith.addf %63, %65 : vector<2x32xf32>
    %cst_18 = arith.constant dense<0.000000e+00> : vector<2x128xf32>
    %67 = tpu.matmul %66, %1, %cst_18 {dimension_numbers = #tpu.dot_dimension_numbers<[1], [0], [0], [1], [0, 0, 1, 1], [], []>} : vector<2x32xf32>, vector<32x128xf32>, vector<2x128xf32> -> vector<2x128xf32>
    %68 = arith.addf %67, %10 : vector<2x128xf32>
    %69 = arith.addf %19, %68 : vector<2x128xf32>
    %70 = arith.negf %69 : vector<2x128xf32>
    %71 = math.exp %70 : vector<2x128xf32>
    %cst_19 = arith.constant 1.000000e+00 : f32
    %72 = vector.broadcast %cst_19 : f32 to vector<2x128xf32>
    %73 = arith.addf %72, %71 : vector<2x128xf32>
    %74 = arith.divf %72, %73 : vector<2x128xf32>
    %75 = vector.extract_strided_slice %74 {offsets = [0, 0], sizes = [2, 32], strides = [1, 1]} : vector<2x128xf32> to vector<2x32xf32>
    %76 = vector.extract_strided_slice %74 {offsets = [0, 32], sizes = [2, 32], strides = [1, 1]} : vector<2x128xf32> to vector<2x32xf32>
    %77 = vector.extract_strided_slice %19 {offsets = [0, 64], sizes = [2, 32], strides = [1, 1]} : vector<2x128xf32> to vector<2x32xf32>
    %78 = vector.extract_strided_slice %68 {offsets = [0, 64], sizes = [2, 32], strides = [1, 1]} : vector<2x128xf32> to vector<2x32xf32>
    %79 = arith.mulf %75, %78 : vector<2x32xf32>
    %80 = arith.addf %77, %79 : vector<2x32xf32>
    %81 = math.tanh %80 : vector<2x32xf32>
    %82 = arith.subf %66, %81 : vector<2x32xf32>
    %83 = arith.mulf %76, %82 : vector<2x32xf32>
    %84 = arith.addf %81, %83 : vector<2x32xf32>
    %cst_20 = arith.constant dense<0.000000e+00> : vector<2x128xf32>
    %85 = tpu.matmul %84, %1, %cst_20 {dimension_numbers = #tpu.dot_dimension_numbers<[1], [0], [0], [1], [0, 0, 1, 1], [], []>} : vector<2x32xf32>, vector<32x128xf32>, vector<2x128xf32> -> vector<2x128xf32>
    %86 = arith.addf %85, %10 : vector<2x128xf32>
    %87 = arith.addf %22, %86 : vector<2x128xf32>
    %88 = arith.negf %87 : vector<2x128xf32>
    %89 = math.exp %88 : vector<2x128xf32>
    %cst_21 = arith.constant 1.000000e+00 : f32
    %90 = vector.broadcast %cst_21 : f32 to vector<2x128xf32>
    %91 = arith.addf %90, %89 : vector<2x128xf32>
    %92 = arith.divf %90, %91 : vector<2x128xf32>
    %93 = vector.extract_strided_slice %92 {offsets = [0, 0], sizes = [2, 32], strides = [1, 1]} : vector<2x128xf32> to vector<2x32xf32>
    %94 = vector.extract_strided_slice %92 {offsets = [0, 32], sizes = [2, 32], strides = [1, 1]} : vector<2x128xf32> to vector<2x32xf32>
    %95 = vector.extract_strided_slice %22 {offsets = [0, 64], sizes = [2, 32], strides = [1, 1]} : vector<2x128xf32> to vector<2x32xf32>
    %96 = vector.extract_strided_slice %86 {offsets = [0, 64], sizes = [2, 32], strides = [1, 1]} : vector<2x128xf32> to vector<2x32xf32>
    %97 = arith.mulf %93, %96 : vector<2x32xf32>
    %98 = arith.addf %95, %97 : vector<2x32xf32>
    %99 = math.tanh %98 : vector<2x32xf32>
    %100 = arith.subf %84, %99 : vector<2x32xf32>
    %101 = arith.mulf %94, %100 : vector<2x32xf32>
    %102 = arith.addf %99, %101 : vector<2x32xf32>
    %cst_22 = arith.constant dense<0.000000e+00> : vector<2x128xf32>
    %103 = tpu.matmul %102, %1, %cst_22 {dimension_numbers = #tpu.dot_dimension_numbers<[1], [0], [0], [1], [0, 0, 1, 1], [], []>} : vector<2x32xf32>, vector<32x128xf32>, vector<2x128xf32> -> vector<2x128xf32>
    %104 = arith.addf %103, %10 : vector<2x128xf32>
    %105 = arith.addf %25, %104 : vector<2x128xf32>
    %106 = arith.negf %105 : vector<2x128xf32>
    %107 = math.exp %106 : vector<2x128xf32>
    %cst_23 = arith.constant 1.000000e+00 : f32
    %108 = vector.broadcast %cst_23 : f32 to vector<2x128xf32>
    %109 = arith.addf %108, %107 : vector<2x128xf32>
    %110 = arith.divf %108, %109 : vector<2x128xf32>
    %111 = vector.extract_strided_slice %110 {offsets = [0, 0], sizes = [2, 32], strides = [1, 1]} : vector<2x128xf32> to vector<2x32xf32>
    %112 = vector.extract_strided_slice %110 {offsets = [0, 32], sizes = [2, 32], strides = [1, 1]} : vector<2x128xf32> to vector<2x32xf32>
    %113 = vector.extract_strided_slice %25 {offsets = [0, 64], sizes = [2, 32], strides = [1, 1]} : vector<2x128xf32> to vector<2x32xf32>
    %114 = vector.extract_strided_slice %104 {offsets = [0, 64], sizes = [2, 32], strides = [1, 1]} : vector<2x128xf32> to vector<2x32xf32>
    %115 = arith.mulf %111, %114 : vector<2x32xf32>
    %116 = arith.addf %113, %115 : vector<2x32xf32>
    %117 = math.tanh %116 : vector<2x32xf32>
    %118 = arith.subf %102, %117 : vector<2x32xf32>
    %119 = arith.mulf %112, %118 : vector<2x32xf32>
    %120 = arith.addf %117, %119 : vector<2x32xf32>
    %cst_24 = arith.constant dense<0.000000e+00> : vector<2x128xf32>
    %121 = tpu.matmul %120, %1, %cst_24 {dimension_numbers = #tpu.dot_dimension_numbers<[1], [0], [0], [1], [0, 0, 1, 1], [], []>} : vector<2x32xf32>, vector<32x128xf32>, vector<2x128xf32> -> vector<2x128xf32>
    %122 = arith.addf %121, %10 : vector<2x128xf32>
    %123 = arith.addf %28, %122 : vector<2x128xf32>
    %124 = arith.negf %123 : vector<2x128xf32>
    %125 = math.exp %124 : vector<2x128xf32>
    %cst_25 = arith.constant 1.000000e+00 : f32
    %126 = vector.broadcast %cst_25 : f32 to vector<2x128xf32>
    %127 = arith.addf %126, %125 : vector<2x128xf32>
    %128 = arith.divf %126, %127 : vector<2x128xf32>
    %129 = vector.extract_strided_slice %128 {offsets = [0, 0], sizes = [2, 32], strides = [1, 1]} : vector<2x128xf32> to vector<2x32xf32>
    %130 = vector.extract_strided_slice %128 {offsets = [0, 32], sizes = [2, 32], strides = [1, 1]} : vector<2x128xf32> to vector<2x32xf32>
    %131 = vector.extract_strided_slice %28 {offsets = [0, 64], sizes = [2, 32], strides = [1, 1]} : vector<2x128xf32> to vector<2x32xf32>
    %132 = vector.extract_strided_slice %122 {offsets = [0, 64], sizes = [2, 32], strides = [1, 1]} : vector<2x128xf32> to vector<2x32xf32>
    %133 = arith.mulf %129, %132 : vector<2x32xf32>
    %134 = arith.addf %131, %133 : vector<2x32xf32>
    %135 = math.tanh %134 : vector<2x32xf32>
    %136 = arith.subf %120, %135 : vector<2x32xf32>
    %137 = arith.mulf %130, %136 : vector<2x32xf32>
    %138 = arith.addf %135, %137 : vector<2x32xf32>
    %cst_26 = arith.constant dense<0.000000e+00> : vector<2x128xf32>
    %139 = tpu.matmul %138, %1, %cst_26 {dimension_numbers = #tpu.dot_dimension_numbers<[1], [0], [0], [1], [0, 0, 1, 1], [], []>} : vector<2x32xf32>, vector<32x128xf32>, vector<2x128xf32> -> vector<2x128xf32>
    %140 = arith.addf %139, %10 : vector<2x128xf32>
    %141 = arith.addf %31, %140 : vector<2x128xf32>
    %142 = arith.negf %141 : vector<2x128xf32>
    %143 = math.exp %142 : vector<2x128xf32>
    %cst_27 = arith.constant 1.000000e+00 : f32
    %144 = vector.broadcast %cst_27 : f32 to vector<2x128xf32>
    %145 = arith.addf %144, %143 : vector<2x128xf32>
    %146 = arith.divf %144, %145 : vector<2x128xf32>
    %147 = vector.extract_strided_slice %146 {offsets = [0, 0], sizes = [2, 32], strides = [1, 1]} : vector<2x128xf32> to vector<2x32xf32>
    %148 = vector.extract_strided_slice %146 {offsets = [0, 32], sizes = [2, 32], strides = [1, 1]} : vector<2x128xf32> to vector<2x32xf32>
    %149 = vector.extract_strided_slice %31 {offsets = [0, 64], sizes = [2, 32], strides = [1, 1]} : vector<2x128xf32> to vector<2x32xf32>
    %150 = vector.extract_strided_slice %140 {offsets = [0, 64], sizes = [2, 32], strides = [1, 1]} : vector<2x128xf32> to vector<2x32xf32>
    %151 = arith.mulf %147, %150 : vector<2x32xf32>
    %152 = arith.addf %149, %151 : vector<2x32xf32>
    %153 = math.tanh %152 : vector<2x32xf32>
    %154 = arith.subf %138, %153 : vector<2x32xf32>
    %155 = arith.mulf %148, %154 : vector<2x32xf32>
    %156 = arith.addf %153, %155 : vector<2x32xf32>
    %cst_28 = arith.constant dense<0.000000e+00> : vector<2x128xf32>
    %157 = tpu.matmul %156, %1, %cst_28 {dimension_numbers = #tpu.dot_dimension_numbers<[1], [0], [0], [1], [0, 0, 1, 1], [], []>} : vector<2x32xf32>, vector<32x128xf32>, vector<2x128xf32> -> vector<2x128xf32>
    %158 = arith.addf %157, %10 : vector<2x128xf32>
    %159 = arith.addf %34, %158 : vector<2x128xf32>
    %160 = arith.negf %159 : vector<2x128xf32>
    %161 = math.exp %160 : vector<2x128xf32>
    %cst_29 = arith.constant 1.000000e+00 : f32
    %162 = vector.broadcast %cst_29 : f32 to vector<2x128xf32>
    %163 = arith.addf %162, %161 : vector<2x128xf32>
    %164 = arith.divf %162, %163 : vector<2x128xf32>
    %165 = vector.extract_strided_slice %164 {offsets = [0, 0], sizes = [2, 32], strides = [1, 1]} : vector<2x128xf32> to vector<2x32xf32>
    %166 = vector.extract_strided_slice %164 {offsets = [0, 32], sizes = [2, 32], strides = [1, 1]} : vector<2x128xf32> to vector<2x32xf32>
    %167 = vector.extract_strided_slice %34 {offsets = [0, 64], sizes = [2, 32], strides = [1, 1]} : vector<2x128xf32> to vector<2x32xf32>
    %168 = vector.extract_strided_slice %158 {offsets = [0, 64], sizes = [2, 32], strides = [1, 1]} : vector<2x128xf32> to vector<2x32xf32>
    %169 = arith.mulf %165, %168 : vector<2x32xf32>
    %170 = arith.addf %167, %169 : vector<2x32xf32>
    %171 = math.tanh %170 : vector<2x32xf32>
    %172 = arith.subf %156, %171 : vector<2x32xf32>
    %173 = arith.mulf %166, %172 : vector<2x32xf32>
    %174 = arith.addf %171, %173 : vector<2x32xf32>
    %cst_30 = arith.constant dense<0.000000e+00> : vector<2x128xf32>
    %175 = tpu.matmul %174, %5, %cst_30 {dimension_numbers = #tpu.dot_dimension_numbers<[1], [0], [0], [1], [0, 0, 1, 1], [], []>} : vector<2x32xf32>, vector<32x128xf32>, vector<2x128xf32> -> vector<2x128xf32>
    %176 = vector.broadcast %4 : vector<1x128xf32> to vector<2x128xf32>
    %177 = arith.addf %175, %176 : vector<2x128xf32>
    %178 = vector.extract_strided_slice %177 {offsets = [0, 0], sizes = [2, 8], strides = [1, 1]} : vector<2x128xf32> to vector<2x8xf32>
    %c0_31 = arith.constant 0 : index
    %c0_32 = arith.constant 0 : index
    %179 = vector.load %arg2[%c0_31, %c0_32] : memref<2x8xf32, #tpu.memory_space<vmem>>, vector<2x8xf32>
    tpu.vector_store %arg2[%c0_31, %c0_32], %178 {strides = array<i32>} : memref<2x8xf32, #tpu.memory_space<vmem>>, vector<2x8xf32>,
    return
  }
}

</mosaic_0001>

<bundles_post_ra>
// kernel: self_model_core_forward.1
= control target key start
LH: loop header
LB: loop body
LE: loop exit
PB: predicated region body
PF: predicated region fallthrough
CT: control target
= control target key end

     0   :  { %7 = vsyncpa [#allocation3], 0  ;;  %s2106_s0 = inlined_call_operand.vmem [shape: f32[2,64], index: 0, kind: input, shape index: {}]   ;;  %s2107_s1 = inlined_call_operand.hbm [shape: f32[80,128], index: 1, kind: input, shape index: {}]   ;;  %s2108_s2 = inlined_call_operand.hbm [shape: f32[2,8], index: 2, kind: output, shape index: {}]  }
   0x1   :  { %8 = vsyncpa [#allocation4], 0  ;;  %s1862_s9 = smov [#allocation2]   ;;  %s1814_s13 = scalar_lea.hbm %s2107_s1, 1280 }
   0x2   :  { %s16_s10 = sshll.u32 %s1862_s9, 4  ;;  %p1815_p0 = scmp.ne.s32.totalorder %s2107_s1, %s1814_s13  ;;  %s17_s10 = int_to_ptr.vmem [resolvable:$true] %s16_s10 }
   0x3   :  { %p1818_p1 = scmp.lt.u32.totalorder %s1814_s13, %s2107_s1 }
   0x5   :  { %p1820_p2 = pnand %p1818_p1, %p1815_p0 }
   0x7   :  { %1823 = shalt.err (!%p1820_p2)
}
   0x8   :  { %s1824_s18 = scalar_lea.vmem %s17_s10, 1280  ;;  %p1829_p4 = scmp.lt.s32.totalorder %s17_s10, %s17_s10 }
   0x9   :  { %p1825_p3 = scmp.ne.s32.totalorder %s17_s10, %s1824_s18  ;;  %p1830_p5 = scmp.lt.s32.totalorder %s1824_s18, %s1824_s18 }
   0xb   :  { %p1831_p6 = por %p1830_p5, %p1829_p4 }
   0xd   :  { %p1832_p7 = pnand %p1831_p6, %p1825_p3 }
   0xf   :  { %1835 = shalt.err (!%p1832_p7)
}
  0x10   :  { %s1863_s19 = smov 128   ;;  %s1864_s20 = smov 8  }
  0x11   :  { %22 = dma.hbm_to_vmem [thread:$0]  %s2107_s1, 1280, %s17_s10, [#allocation3], %s1863_s19, %s1863_s19, %s1864_s20  }
  0x12   :  { %1858 = dma.done.wait [#allocation3], 1280  }
  0x13   :  { %1859 = vsyncadd [#allocation3], 4294966016  ;;  %v1865_v0 = vmov 0.0   ;;  %vm1866_vm0 = vmmov 0   ;;  %vm47_vm1 = vcmask 64512   ;;  %v1911_v1 = vld [vmem:[#allocation2] sm:$0xff] }
  0x14   :  { %1574 = vmatprep.subr.mxu0 %v1865_v0  ;;  %1576 = vmatprep.mubr.msk.f32.mxu0 %vm1866_vm0, %v1865_v0  ;;  %v1916_v2 = vld [vmem:[%s2106_s0] sm:$0x3]  ;;  %v1918_v3 = vld [vmem:[#allocation2 + $0x29] ss:$0 sm:$0xff]  ;;  %s1867_s1 = smov 64   ;;  %s1868_s0 = smov 112  }
  0x15   :  { %1579 = vmatprep.subr.mxu1 %v1865_v0  ;;  %1581 = vmatprep.mubr.msk.f32.mxu1 %vm1866_vm0, %v1865_v0  ;;  %v1932_v4 = vld [vmem:[#allocation2 + $0x28] ss:$0 sm:$0xff]  ;;  %s1869_s25 = smov 80   ;;  %s1870_s26 = smov 96   ;;  %v28_v25 = vld [vmem:[#allocation2 + $0x10] sm:$0xff]  ;;  %v1873_v28 = vmov 0.0|0.0  }
  0x16   :  { %1575 = vmatpush3.msra.mxu0 %v1911_v1  ;;  %646 = vrot.lane.b32.xlu0 %v1918_v3, %s1867_s1  ;;  %s1871_s27 = smov 120   ;;  %s1872_s28 = smov 32   ;;  %v27_v24 = vld [vmem:[#allocation2 + $0x8] sm:$0xff]  ;;  %v29_v29 = vld [vmem:[#allocation2 + $0x18] sm:$0xff]  ;;  %v30_v30 = vld [vmem:[#allocation2 + $0x20] sm:$0xff]  ;;  %vm669_vm2 = vcmask 261120  }
  0x17   :  { %1577 = vmatmul.mubr.msk.f32.vlgmr.msra.gmra.mrb[0].mxu0 %vm47_vm1, %v1916_v2  ;;  %1584 = vmatprep.subr.mxu0 %v1865_v0  ;;  %v1958_v27 = vpack.c.bf16 %v28_v25, %v27_v24  ;;  %v1963_v31 = vpack.c.bf16 %v30_v30, %v29_v29  ;;  %s1874_s29 = smov 104   ;;  %s1875_s30 = smov 72   ;;  %vm1474_vm3 = vcmask 58368  }
  0x18   :  { %1585 = vmatpush3.msra.mxu0 %v1911_v1  ;;  %1586 = vmatprep.mubr.msk.f32.mxu0 %vm1866_vm0, %v1865_v0  ;;  %s1876_s3 = smov 88   ;;  %s1877_s4 = smov [#allocation5]  }
  0x19   :  { %1594 = vmatprep.subr.mxu0 %v1865_v0  ;;  %1580 = vmatpush3.msra.mxu1 %v1911_v1  ;;  %s1482_s5 = sshll.u32 %s1877_s4, 4  ;;  %s1483_s5 = int_to_ptr.vmem [resolvable:$true] %s1482_s5 }
  0x1a   :  { %1589 = vmatprep.subr.mxu1 %v1865_v0  ;;  %s1836_s6 = scalar_lea.vmem %s1483_s5, 32  ;;  %p1841_p9 = scmp.lt.s32.totalorder %s1483_s5, %s1483_s5 }
  0x1b   :  { %p1837_p8 = scmp.ne.s32.totalorder %s1483_s5, %s1836_s6  ;;  %p1842_p10 = scmp.lt.s32.totalorder %s1836_s6, %s1836_s6 }
  0x1d   :  { %p1843_p11 = por %p1842_p10, %p1841_p9 }
  0x1f   :  { %p1844_p12 = pnand %p1843_p11, %p1837_p8 }
  0x88   :  { %v647_v11 = vpop.permute.xlu0 %646 }
  0xea   :  { %v117_v5 = vpop.f32.mrb[0].mxu0 }
  0xeb   :  { %v118_v6 = vadd.f32 %v1932_v4, %v117_v5  ;;  %v1578_v7 = vpop.f32.mrb[1].mxu0 }
  0xed   :  { %v1501_v8 = vmul.f32 -1.442695, %v118_v6 }
  0xef   :  { %1766 = vpow2.f32 %v1501_v8 }
  0xf9   :  { %v1767_v9 = vpop.eup %1766 }
  0xfa   :  { %v642_v10 = vadd.f32 1.0, %v1767_v9 }
  0xfc   :  { %1768 = vrcp.f32 %v642_v10 }
 0x106   :  { %v1769_v12 = vpop.eup %1768 }
 0x107   :  { %v649_v13 = vmul.f32 %v1769_v12, %v647_v11 }
 0x109   :  { %651 = vrot.lane.b32.xlu0 %v649_v13, %s1867_s1 }
 0x10d   :  { %195 = vrot.lane.b32.xlu0 %v1916_v2, %s1868_s0 }
 0x111   :  { %491 = vrot.lane.b32.xlu0 %v1916_v2, %s1869_s25 }
 0x115   :  { %121 = vrot.lane.b32.xlu0 %v1916_v2, %s1871_s27 }
 0x17b   :  { %v652_v14 = vpop.permute.xlu0 %651 }
 0x17c   :  { %v654_v15 = vadd.f32 %v652_v14, %v118_v6 }
 0x17e   :  { %1770 = vtanh.f32 %v654_v15 }
 0x17f   :  { %v196_v17 = vpop.permute.xlu0 %195 }
 0x180   :  { %1587 = vmatmul.mubr.msk.f32.vlgmr.msra.gmra.mrb[2].mxu0 %vm47_vm1, %v196_v17 }
 0x181   :  { %1595 = vmatpush3.msra.mxu0 %v1911_v1  ;;  %1596 = vmatprep.mubr.msk.f32.mxu0 %vm1866_vm0, %v1865_v0 }
 0x182   :  { %1604 = vmatprep.subr.mxu0 %v1865_v0 }
 0x183   :  { %v492_v20 = vpop.permute.xlu0 %491 }
 0x187   :  { %v122_v21 = vpop.permute.xlu0 %121 }
 0x188   :  { %v1771_v16 = vpop.eup %1770  ;;  %1582 = vmatmul.mubr.msk.f32.vlgmr.msra.gmra.mrb[0].mxu1 %vm47_vm1, %v122_v21 }
 0x189   :  { %657 = vrot.lane.b32.xlu1 %v1771_v16, %s1870_s26  ;;  %1590 = vmatpush3.msra.mxu1 %v1911_v1 }
 0x18a   :  { %1591 = vmatprep.mubr.msk.f32.mxu1 %vm1866_vm0, %v1865_v0  ;;  %1599 = vmatprep.subr.mxu1 %v1865_v0 }
 0x1fb   :  { %v658_v18 = vpop.permute.xlu1 %657 }
 0x1fc   :  { %v660_v19 = vmul.f32 %v1769_v12, %v658_v18 }
 0x1fe   :  { %662 = vrot.lane.b32.xlu1 %v660_v19, %s1872_s28 }
 0x202   :  { %343 = vrot.lane.b32.xlu1 %v1916_v2, %s1870_s26 }
 0x253   :  { %v1970_v32 = vpop.f32.mrb[2].mxu0 }
 0x254   :  { %v1588_v33 = vpop.f32.mrb[3].mxu0  ;;  %v266_v12 = vadd.f32 %v1932_v4, %v1970_v32 }
 0x25b   :  { %v191_v35 = vpop.f32.mrb[0].mxu1 }
 0x25c   :  { %v1583_v36 = vpop.f32.mrb[1].mxu1  ;;  %v192_v44 = vadd.f32 %v1932_v4, %v191_v35 }
 0x270   :  { %v663_v22 = vpop.permute.xlu1 %662 }
 0x271   :  { %v665_v23 = vsub.f32 %v1771_v16, %v663_v22 }
 0x273   :  { %667 = vrot.lane.b32.xlu1 %v665_v23, %s1867_s1 }
 0x274   :  { %v344_v26 = vpop.permute.xlu1 %343 }
 0x275   :  { %1597 = vmatmul.mubr.msk.f32.vlgmr.msra.gmra.mrb[4].mxu0 %vm47_vm1, %v344_v26 }
 0x276   :  { %1605 = vmatpush3.msra.mxu0 %v1911_v1  ;;  %1606 = vmatprep.mubr.msk.f32.mxu0 %vm1866_vm0, %v1865_v0 }
 0x277   :  { %1702 = vmatprep.subr.bf16.mxu0 %v1873_v28 }
 0x279   :  { %1607 = vmatmul.mubr.msk.f32.vlgmr.msra.gmra.mrb[6].mxu0 %vm47_vm1, %v492_v20 }
 0x27a   :  { %1704 = vmatpush3.bf16.msra.mxu0 %v1958_v27  ;;  %1622 = vmatprep.mubr.msk.f32.mxu0 %vm1866_vm0, %v1865_v0 }
 0x27b   :  { %1705 = vmatprep.subr.bf16.mxu0 %v1873_v28 }
 0x27e   :  { %1707 = vmatpush3.bf16.msra.mxu0 %v1963_v31 }
 0x27f   :  { %1714 = vmatprep.subr.bf16.mxu0 %v1873_v28 }
 0x2e5   :  { %v668_v34 = vpop.permute.xlu1 %667 }
 0x2e6   :  { %1623 = vmatmul.mubr.msk.f32.vlgmr.msra.gmra.mrb[8].mxu0 %vm669_vm2, %v668_v34 }
 0x2e7   :  { %1716 = vmatpush3.bf16.msra.mxu0 %v1958_v27  ;;  %1644 = vmatprep.mubr.msk.f32.mxu0 %vm1866_vm0, %v1865_v0 }
 0x2e8   :  { %1717 = vmatprep.subr.bf16.mxu0 %v1873_v28 }
 0x2eb   :  { %1719 = vmatpush3.bf16.msra.mxu0 %v1963_v31 }
 0x2ec   :  { %1726 = vmatprep.subr.bf16.mxu0 %v1873_v28 }
 0x348   :  { %v1979_v37 = vpop.f32.mrb[4].mxu0 }
 0x349   :  { %v1598_v38 = vpop.f32.mrb[5].mxu0 }
 0x34c   :  { %v1981_v39 = vpop.f32.mrb[6].mxu0 }
 0x34d   :  { %v1608_v40 = vpop.f32.mrb[7].mxu0 }
 0x3b9   :  { %v738_v41 = vpop.f32.mrb[8].mxu0 }
 0x3ba   :  { %v739_v42 = vadd.f32 %v1918_v3, %v738_v41  ;;  %v1624_v43 = vpop.f32.mrb[9].mxu0 }
 0x3bc   :  { %750 = vrot.lane.b32.xlu1 %v739_v42, %s1867_s1  ;;  %v742_v45 = vadd.f32 %v739_v42, %v192_v44 }
 0x3be   :  { %v1503_v46 = vmul.f32 -1.442695, %v742_v45 }
 0x3c0   :  { %1772 = vpow2.f32 %v1503_v46 }
 0x3ca   :  { %v1773_v47 = vpop.eup %1772 }
 0x3cb   :  { %v746_v48 = vadd.f32 1.0, %v1773_v47 }
 0x3cd   :  { %1774 = vrcp.f32 %v746_v48 }
 0x3d7   :  { %v1775_v49 = vpop.eup %1774 }
 0x42e   :  { %v751_v50 = vpop.permute.xlu1 %750 }
 0x42f   :  { %v753_v51 = vmul.f32 %v1775_v49, %v751_v50 }
 0x431   :  { %755 = vrot.lane.b32.xlu0 %v753_v51, %s1867_s1 }
 0x4a3   :  { %v756_v52 = vpop.permute.xlu0 %755 }
 0x4a4   :  { %v758_v53 = vadd.f32 %v756_v52, %v192_v44 }
 0x4a6   :  { %1776 = vtanh.f32 %v758_v53 }
 0x4b0   :  { %v1777_v54 = vpop.eup %1776 }
 0x4b1   :  { %v760_v55 = vsub.f32 %v665_v23, %v1777_v54 }
 0x4b3   :  { %762 = vrot.lane.b32.xlu1 %v760_v55, %s1870_s26 }
 0x4b7   :  { %269 = vrot.lane.b32.xlu1 %v1916_v2, %s1874_s29 }
 0x4bb   :  { %565 = vrot.lane.b32.xlu1 %v1916_v2, %s1875_s30 }
 0x525   :  { %v763_v56 = vpop.permute.xlu1 %762 }
 0x526   :  { %v765_v57 = vmul.f32 %v1775_v49, %v763_v56 }
 0x528   :  { %767 = vrot.lane.b32.xlu0 %v765_v57, %s1872_s28  ;;  %v414_v57 = vadd.f32 %v1932_v4, %v1979_v37 }
 0x529   :  { %v270_v58 = vpop.permute.xlu1 %269 }
 0x52a   :  { %1592 = vmatmul.mubr.msk.f32.vlgmr.msra.gmra.mrb[2].mxu1 %vm47_vm1, %v270_v58 }
 0x52b   :  { %1600 = vmatpush3.msra.mxu1 %v1911_v1  ;;  %1601 = vmatprep.mubr.msk.f32.mxu1 %vm1866_vm0, %v1865_v0 }
 0x52c   :  { %417 = vrot.lane.b32.xlu0 %v1916_v2, %s1876_s3  ;;  %1609 = vmatprep.subr.mxu1 %v1865_v0 }
 0x52d   :  { %v566_v62 = vpop.permute.xlu1 %565 }
 0x59a   :  { %v768_v59 = vpop.permute.xlu0 %767 }
 0x59b   :  { %v770_v60 = vadd.f32 %v1777_v54, %v768_v59 }
 0x59d   :  { %772 = vrot.lane.b32.xlu0 %v770_v60, %s1867_s1 }
 0x59e   :  { %v418_v61 = vpop.permute.xlu0 %417 }
 0x59f   :  { %1602 = vmatmul.mubr.msk.f32.vlgmr.msra.gmra.mrb[4].mxu1 %vm47_vm1, %v418_v61 }
 0x5a0   :  { %1610 = vmatpush3.msra.mxu1 %v1911_v1  ;;  %1611 = vmatprep.mubr.msk.f32.mxu1 %vm1866_vm0, %v1865_v0 }
 0x5a1   :  { %1708 = vmatprep.subr.bf16.mxu1 %v1873_v28 }
 0x5a3   :  { %1612 = vmatmul.mubr.msk.f32.vlgmr.msra.gmra.mrb[6].mxu1 %vm47_vm1, %v566_v62 }
 0x5a4   :  { %1710 = vmatpush3.bf16.msra.mxu1 %v1958_v27  ;;  %1633 = vmatprep.mubr.msk.f32.mxu1 %vm1866_vm0, %v1865_v0 }
 0x5a5   :  { %1711 = vmatprep.subr.bf16.mxu1 %v1873_v28 }
 0x5a8   :  { %1713 = vmatpush3.bf16.msra.mxu1 %v1963_v31 }
 0x5a9   :  { %1720 = vmatprep.subr.bf16.mxu1 %v1873_v28 }
 0x5fd   :  { %v339_v63 = vpop.f32.mrb[2].mxu1 }
 0x5fe   :  { %v1593_v1 = vpop.f32.mrb[3].mxu1  ;;  %v340_v35 = vadd.f32 %v1932_v4, %v339_v63 }
 0x60f   :  { %v773_v2 = vpop.permute.xlu0 %772 }
 0x610   :  { %1634 = vmatmul.mubr.msk.f32.vlgmr.msra.gmra.mrb[8].mxu1 %vm669_vm2, %v773_v2 }
 0x611   :  { %1722 = vmatpush3.bf16.msra.mxu1 %v1958_v27  ;;  %1655 = vmatprep.mubr.msk.f32.mxu1 %vm1866_vm0, %v1865_v0 }
 0x612   :  { %1723 = vmatprep.subr.bf16.mxu1 %v1873_v28 }
 0x615   :  { %1725 = vmatpush3.bf16.msra.mxu1 %v1963_v31 }
 0x616   :  { %1732 = vmatprep.subr.bf16.mxu1 %v1873_v28 }
 0x672   :  { %v2017_v5 = vpop.f32.mrb[4].mxu1 }
 0x673   :  { %v1603_v6 = vpop.f32.mrb[5].mxu1 }
 0x676   :  { %v2019_v7 = vpop.f32.mrb[6].mxu1 }
 0x677   :  { %v1613_v8 = vpop.f32.mrb[7].mxu1 }
 0x6e3   :  { %v842_v9 = vpop.f32.mrb[8].mxu1 }
 0x6e4   :  { %v843_v10 = vadd.f32 %v1918_v3, %v842_v9  ;;  %v1635_v11 = vpop.f32.mrb[9].mxu1 }
 0x6e6   :  { %854 = vrot.lane.b32.xlu1 %v843_v10, %s1867_s1  ;;  %v846_v13 = vadd.f32 %v843_v10, %v266_v12 }
 0x6e8   :  { %v1505_v14 = vmul.f32 -1.442695, %v846_v13 }
 0x6ea   :  { %1778 = vpow2.f32 %v1505_v14 }
 0x6f4   :  { %v1779_v15 = vpop.eup %1778 }
 0x6f5   :  { %v850_v16 = vadd.f32 1.0, %v1779_v15 }
 0x6f7   :  { %1780 = vrcp.f32 %v850_v16 }
 0x701   :  { %v1781_v17 = vpop.eup %1780 }
 0x758   :  { %v855_v18 = vpop.permute.xlu1 %854 }
 0x759   :  { %v857_v19 = vmul.f32 %v1781_v17, %v855_v18 }
 0x75b   :  { %859 = vrot.lane.b32.xlu0 %v857_v19, %s1867_s1 }
 0x7cd   :  { %v860_v20 = vpop.permute.xlu0 %859 }
 0x7ce   :  { %v862_v21 = vadd.f32 %v860_v20, %v266_v12 }
 0x7d0   :  { %1782 = vtanh.f32 %v862_v21 }
 0x7da   :  { %v1783_v22 = vpop.eup %1782 }
 0x7db   :  { %v864_v23 = vsub.f32 %v770_v60, %v1783_v22 }
 0x7dd   :  { %866 = vrot.lane.b32.xlu1 %v864_v23, %s1870_s26 }
 0x84f   :  { %v867_v24 = vpop.permute.xlu1 %866 }
 0x850   :  { %v869_v25 = vmul.f32 %v1781_v17, %v867_v24  ;;  %v488_v17 = vadd.f32 %v1932_v4, %v2017_v5 }
 0x852   :  { %871 = vrot.lane.b32.xlu0 %v869_v25, %s1872_s28 }
 0x8c4   :  { %v872_v26 = vpop.permute.xlu0 %871 }
 0x8c5   :  { %v874_v29 = vadd.f32 %v1783_v22, %v872_v26 }
 0x8c7   :  { %876 = vrot.lane.b32.xlu1 %v874_v29, %s1867_s1 }
 0x939   :  { %v877_v30 = vpop.permute.xlu1 %876 }
 0x93a   :  { %1645 = vmatmul.mubr.msk.f32.vlgmr.msra.gmra.mrb[10].mxu0 %vm669_vm2, %v877_v30 }
 0x93b   :  { %1728 = vmatpush3.bf16.msra.mxu0 %v1958_v27  ;;  %1666 = vmatprep.mubr.msk.f32.mxu0 %vm1866_vm0, %v1865_v0 }
 0x93c   :  { %1729 = vmatprep.subr.bf16.mxu0 %v1873_v28 }
 0x93f   :  { %1731 = vmatpush3.bf16.msra.mxu0 %v1963_v31 }
 0x940   :  { %1738 = vmatprep.subr.bf16.mxu0 %v1873_v28 }
 0xa0d   :  { %v946_v32 = vpop.f32.mrb[10].mxu0 }
 0xa0e   :  { %v947_v33 = vadd.f32 %v1918_v3, %v946_v32  ;;  %v1646_v34 = vpop.f32.mrb[11].mxu0 }
 0xa10   :  { %958 = vrot.lane.b32.xlu0 %v947_v33, %s1867_s1  ;;  %v950_v36 = vadd.f32 %v947_v33, %v340_v35 }
 0xa12   :  { %v1507_v38 = vmul.f32 -1.442695, %v950_v36 }
 0xa14   :  { %1784 = vpow2.f32 %v1507_v38  ;;  %v562_v38 = vadd.f32 %v1932_v4, %v1981_v39 }
 0xa1e   :  { %v1785_v40 = vpop.eup %1784 }
 0xa1f   :  { %v954_v41 = vadd.f32 1.0, %v1785_v40 }
 0xa21   :  { %1786 = vrcp.f32 %v954_v41 }
 0xa2b   :  { %v1787_v42 = vpop.eup %1786 }
 0xa82   :  { %v959_v43 = vpop.permute.xlu0 %958 }
 0xa83   :  { %v961_v44 = vmul.f32 %v1787_v42, %v959_v43 }
 0xa85   :  { %963 = vrot.lane.b32.xlu1 %v961_v44, %s1867_s1 }
 0xaf7   :  { %v964_v45 = vpop.permute.xlu1 %963 }
 0xaf8   :  { %v966_v46 = vadd.f32 %v964_v45, %v340_v35 }
 0xafa   :  { %1788 = vtanh.f32 %v966_v46 }
 0xb04   :  { %v1789_v47 = vpop.eup %1788 }
 0xb05   :  { %v968_v48 = vsub.f32 %v874_v29, %v1789_v47 }
 0xb07   :  { %970 = vrot.lane.b32.xlu0 %v968_v48, %s1870_s26 }
 0xb79   :  { %v971_v49 = vpop.permute.xlu0 %970 }
 0xb7a   :  { %v973_v50 = vmul.f32 %v1787_v42, %v971_v49 }
 0xb7c   :  { %975 = vrot.lane.b32.xlu1 %v973_v50, %s1872_s28 }
 0xbee   :  { %v976_v51 = vpop.permute.xlu1 %975 }
 0xbef   :  { %v978_v52 = vadd.f32 %v1789_v47, %v976_v51 }
 0xbf1   :  { %980 = vrot.lane.b32.xlu0 %v978_v52, %s1867_s1 }
 0xc63   :  { %v981_v53 = vpop.permute.xlu0 %980 }
 0xc64   :  { %1656 = vmatmul.mubr.msk.f32.vlgmr.msra.gmra.mrb[10].mxu1 %vm669_vm2, %v981_v53 }
 0xc65   :  { %1734 = vmatpush3.bf16.msra.mxu1 %v1958_v27  ;;  %1677 = vmatprep.mubr.msk.f32.mxu1 %vm1866_vm0, %v1865_v0 }
 0xc66   :  { %1735 = vmatprep.subr.bf16.mxu1 %v1873_v28 }
 0xc69   :  { %1737 = vmatpush3.bf16.msra.mxu1 %v1963_v31 }
 0xc6a   :  { %1744 = vmatprep.subr.bf16.mxu1 %v1873_v28 }
 0xd37   :  { %v1050_v54 = vpop.f32.mrb[10].mxu1 }
 0xd38   :  { %v1051_v55 = vadd.f32 %v1918_v3, %v1050_v54  ;;  %v1657_v56 = vpop.f32.mrb[11].mxu1 }
 0xd3a   :  { %1062 = vrot.lane.b32.xlu1 %v1051_v55, %s1867_s1  ;;  %v1054_v58 = vadd.f32 %v1051_v55, %v414_v57 }
 0xd3c   :  { %v1509_v59 = vmul.f32 -1.442695, %v1054_v58 }
 0xd3e   :  { %1790 = vpow2.f32 %v1509_v59 }
 0xd48   :  { %v1791_v60 = vpop.eup %1790 }
 0xd49   :  { %v1058_v61 = vadd.f32 1.0, %v1791_v60 }
 0xd4b   :  { %1792 = vrcp.f32 %v1058_v61 }
 0xd55   :  { %v1793_v62 = vpop.eup %1792 }
 0xdac   :  { %v1063_v63 = vpop.permute.xlu1 %1062 }
 0xdad   :  { %v1065_v1 = vmul.f32 %v1793_v62, %v1063_v63 }
 0xdaf   :  { %1067 = vrot.lane.b32.xlu0 %v1065_v1, %s1867_s1 }
 0xe21   :  { %v1068_v2 = vpop.permute.xlu0 %1067 }
 0xe22   :  { %v1070_v6 = vadd.f32 %v1068_v2, %v414_v57  ;;  %v636_v57 = vadd.f32 %v1932_v4, %v2019_v7  ;;  %v35_v4 = vld [vmem:[#allocation2 + $0x38] sm:$0xff]  ;;  %v36_v7 = vld [vmem:[#allocation2 + $0x40] sm:$0xff] }
 0xe24   :  { %1794 = vtanh.f32 %v1070_v6 }
 0xe2e   :  { %v1795_v8 = vpop.eup %1794 }
 0xe2f   :  { %v1072_v9 = vsub.f32 %v978_v52, %v1795_v8 }
 0xe31   :  { %1074 = vrot.lane.b32.xlu1 %v1072_v9, %s1870_s26  ;;  %v34_v9 = vld [vmem:[#allocation2 + $0x30] sm:$0xff] }
 0xea3   :  { %v1075_v10 = vpop.permute.xlu1 %1074 }
 0xea4   :  { %v1077_v37 = vmul.f32 %v1793_v62, %v1075_v10  ;;  %v1745_v10 = vpack.c.bf16 %v35_v4, %v34_v9 }
 0xea6   :  { %1079 = vrot.lane.b32.xlu0 %v1077_v37, %s1872_s28  ;;  %v37_v37 = vld [vmem:[#allocation2 + $0x48] sm:$0xff] }
 0xf18   :  { %v1080_v11 = vpop.permute.xlu0 %1079 }
 0xf19   :  { %v1082_v12 = vadd.f32 %v1795_v8, %v1080_v11  ;;  %v1748_v11 = vpack.c.bf16 %v37_v37, %v36_v7 }
 0xf1b   :  { %1084 = vrot.lane.b32.xlu1 %v1082_v12, %s1867_s1 }
 0xf8d   :  { %v1085_v13 = vpop.permute.xlu1 %1084 }
 0xf8e   :  { %1667 = vmatmul.mubr.msk.f32.vlgmr.msra.gmra.mrb[12].mxu0 %vm669_vm2, %v1085_v13 }
 0xf8f   :  { %1740 = vmatpush3.bf16.msra.mxu0 %v1958_v27  ;;  %1688 = vmatprep.mubr.msk.f32.mxu0 %vm1866_vm0, %v1865_v0 }
 0xf90   :  { %1741 = vmatprep.subr.bf16.mxu0 %v1873_v28 }
 0xf93   :  { %1743 = vmatpush3.bf16.msra.mxu0 %v1963_v31 }
0x1061   :  { %v1154_v14 = vpop.f32.mrb[12].mxu0 }
0x1062   :  { %v1155_v15 = vadd.f32 %v1918_v3, %v1154_v14  ;;  %v1668_v16 = vpop.f32.mrb[13].mxu0 }
0x1064   :  { %1166 = vrot.lane.b32.xlu0 %v1155_v15, %s1867_s1  ;;  %v1158_v18 = vadd.f32 %v1155_v15, %v488_v17 }
0x1066   :  { %v1511_v19 = vmul.f32 -1.442695, %v1158_v18 }
0x1068   :  { %1796 = vpow2.f32 %v1511_v19 }
0x1072   :  { %v1797_v27 = vpop.eup %1796 }
0x1073   :  { %v1162_v20 = vadd.f32 1.0, %v1797_v27 }
0x1075   :  { %1798 = vrcp.f32 %v1162_v20 }
0x107f   :  { %v1799_v21 = vpop.eup %1798 }
0x10d6   :  { %v1167_v22 = vpop.permute.xlu0 %1166 }
0x10d7   :  { %v1169_v23 = vmul.f32 %v1799_v21, %v1167_v22 }
0x10d9   :  { %1171 = vrot.lane.b32.xlu1 %v1169_v23, %s1867_s1 }
0x114b   :  { %v1172_v31 = vpop.permute.xlu1 %1171 }
0x114c   :  { %v1174_v24 = vadd.f32 %v1172_v31, %v488_v17  ;;  %v1516_v17 = vld [vmem:[#allocation2 + $0x2a] ss:$0 sm:$0xff] }
0x114e   :  { %1800 = vtanh.f32 %v1174_v24 }
0x1158   :  { %v1801_v25 = vpop.eup %1800 }
0x1159   :  { %v1176_v26 = vsub.f32 %v1082_v12, %v1801_v25 }
0x115b   :  { %1178 = vrot.lane.b32.xlu0 %v1176_v26, %s1870_s26 }
0x11cd   :  { %v1179_v29 = vpop.permute.xlu0 %1178 }
0x11ce   :  { %v1181_v5 = vmul.f32 %v1799_v21, %v1179_v29 }
0x11d0   :  { %1183 = vrot.lane.b32.xlu1 %v1181_v5, %s1872_s28 }
0x1242   :  { %v1184_v30 = vpop.permute.xlu1 %1183 }
0x1243   :  { %v1186_v32 = vadd.f32 %v1801_v25, %v1184_v30 }
0x1245   :  { %1188 = vrot.lane.b32.xlu0 %v1186_v32, %s1867_s1 }
0x12b7   :  { %v1189_v33 = vpop.permute.xlu0 %1188 }
0x12b8   :  { %1678 = vmatmul.mubr.msk.f32.vlgmr.msra.gmra.mrb[12].mxu1 %vm669_vm2, %v1189_v33 }
0x12b9   :  { %1699 = vmatprep.mubr.msk.f32.mxu1 %vm1866_vm0, %v1865_v0  ;;  %1746 = vmatpush3.bf16.msra.mxu1 %v1745_v10 }
0x12ba   :  { %1747 = vmatprep.subr.bf16.mxu1 %v1873_v28 }
0x12bd   :  { %1749 = vmatpush3.bf16.msra.mxu1 %v1748_v11 }
0x138b   :  { %v1258_v34 = vpop.f32.mrb[12].mxu1 }
0x138c   :  { %v1259_v35 = vadd.f32 %v1918_v3, %v1258_v34  ;;  %v1679_v36 = vpop.f32.mrb[13].mxu1 }
0x138e   :  { %1270 = vrot.lane.b32.xlu1 %v1259_v35, %s1867_s1  ;;  %v1262_v40 = vadd.f32 %v1259_v35, %v562_v38 }
0x1390   :  { %v1513_v41 = vmul.f32 -1.442695, %v1262_v40 }
0x1392   :  { %1802 = vpow2.f32 %v1513_v41 }
0x139c   :  { %v1803_v42 = vpop.eup %1802 }
0x139d   :  { %v1266_v43 = vadd.f32 1.0, %v1803_v42 }
0x139f   :  { %1804 = vrcp.f32 %v1266_v43 }
0x13a9   :  { %v1805_v44 = vpop.eup %1804 }
0x1400   :  { %v1271_v45 = vpop.permute.xlu1 %1270 }
0x1401   :  { %v1273_v46 = vmul.f32 %v1805_v44, %v1271_v45 }
0x1403   :  { %1275 = vrot.lane.b32.xlu0 %v1273_v46, %s1867_s1 }
0x1475   :  { %v1276_v0 = vpop.permute.xlu0 %1275 }
0x1476   :  { %v1278_v47 = vadd.f32 %v1276_v0, %v562_v38 }
0x1478   :  { %1806 = vtanh.f32 %v1278_v47 }
0x1482   :  { %v1807_v48 = vpop.eup %1806 }
0x1483   :  { %v1280_v49 = vsub.f32 %v1186_v32, %v1807_v48 }
0x1485   :  { %1282 = vrot.lane.b32.xlu1 %v1280_v49, %s1870_s26 }
0x14f7   :  { %v1283_v50 = vpop.permute.xlu1 %1282 }
0x14f8   :  { %v1285_v39 = vmul.f32 %v1805_v44, %v1283_v50 }
0x14fa   :  { %1287 = vrot.lane.b32.xlu0 %v1285_v39, %s1872_s28 }
0x156c   :  { %v1288_v51 = vpop.permute.xlu0 %1287 }
0x156d   :  { %v1290_v52 = vadd.f32 %v1807_v48, %v1288_v51 }
0x156f   :  { %1292 = vrot.lane.b32.xlu1 %v1290_v52, %s1867_s1 }
0x15e1   :  { %v1293_v53 = vpop.permute.xlu1 %1292 }
0x15e2   :  { %1689 = vmatmul.mubr.msk.f32.vlgmr.msra.gmra.mrb[14].mxu0 %vm669_vm2, %v1293_v53 }
0x16b5   :  { %v1362_v54 = vpop.f32.mrb[14].mxu0 }
0x16b6   :  { %v1363_v55 = vadd.f32 %v1918_v3, %v1362_v54  ;;  %v1690_v56 = vpop.f32.mrb[15].mxu0 }
0x16b8   :  { %1374 = vrot.lane.b32.xlu0 %v1363_v55, %s1867_s1  ;;  %v1366_v58 = vadd.f32 %v1363_v55, %v636_v57 }
0x16ba   :  { %v1515_v59 = vmul.f32 -1.442695, %v1366_v58 }
0x16bc   :  { %1808 = vpow2.f32 %v1515_v59 }
0x16c6   :  { %v1809_v60 = vpop.eup %1808 }
0x16c7   :  { %v1370_v61 = vadd.f32 1.0, %v1809_v60 }
0x16c9   :  { %1810 = vrcp.f32 %v1370_v61 }
0x16d3   :  { %v1811_v62 = vpop.eup %1810 }
0x172a   :  { %v1375_v63 = vpop.permute.xlu0 %1374 }
0x172b   :  { %v1377_v1 = vmul.f32 %v1811_v62, %v1375_v63 }
0x172d   :  { %1379 = vrot.lane.b32.xlu1 %v1377_v1, %s1867_s1 }
0x179f   :  { %v1380_v2 = vpop.permute.xlu1 %1379 }
0x17a0   :  { %v1382_v6 = vadd.f32 %v1380_v2, %v636_v57 }
0x17a2   :  { %1812 = vtanh.f32 %v1382_v6 }
0x17ac   :  { %v1813_v3 = vpop.eup %1812 }
0x17ad   :  { %v1384_v8 = vsub.f32 %v1290_v52, %v1813_v3 }
0x17af   :  { %1386 = vrot.lane.b32.xlu0 %v1384_v8, %s1870_s26 }
0x1821   :  { %v1387_v12 = vpop.permute.xlu0 %1386 }
0x1822   :  { %v1389_v13 = vmul.f32 %v1811_v62, %v1387_v12 }
0x1824   :  { %1391 = vrot.lane.b32.xlu1 %v1389_v13, %s1872_s28 }
0x1896   :  { %v1392_v14 = vpop.permute.xlu1 %1391 }
0x1897   :  { %v1394_v15 = vadd.f32 %v1813_v3, %v1392_v14 }
0x1899   :  { %1400 = vrot.lane.b32.xlu0 %v1394_v15, %s1867_s1 }
0x190b   :  { %v1401_v16 = vpop.permute.xlu0 %1400 }
0x190c   :  { %1700 = vmatmul.mubr.msk.f32.vlgmr.msra.gmra.mrb[14].mxu1 %vm669_vm2, %v1401_v16 }
0x19df   :  { %v1470_v18 = vpop.f32.mrb[14].mxu1 }
0x19e0   :  { %v1471_v19 = vadd.f32 %v1516_v17, %v1470_v18  ;;  %v1701_v27 = vpop.f32.mrb[15].mxu1 }
0x19e2   :  { %1475 = vst.msk [vmem:[#allocation5] sm:$0x3] %vm1474_vm3, %v1471_v19 }
0x19e3   :  { %1847 = shalt.err (!%p1844_p12)
}
0x19e4   :  { %s1848_s9 = scalar_lea.hbm %s2108_s2, 32 }
0x19e5   :  { %p1849_p13 = scmp.ne.s32.totalorder %s2108_s2, %s1848_s9  ;;  %p1852_p0 = scmp.lt.u32.totalorder %s1848_s9, %s2108_s2 }
0x19e7   :  { %p1854_p1 = pnand %p1852_p0, %p1849_p13 }
0x19e9   :  { %1857 = shalt.err (!%p1854_p1)
}
0x19ea   :  { %1485 = dma.vmem_to_hbm [thread:$0]  %s1483_s5, 32, %s2108_s2, [#allocation4]  }
0x19eb   :  { %1860 = dma.done.wait [#allocation4], 32  }
0x19ec   :  { %1861 = vsyncadd [#allocation4], 4294967264 }
0x19ed   :  { %1489 = vsyncpa [#allocation3], 1 }
0x19ee   :  { %1490 = vsyncpa [#allocation4], 1 }

</bundles_post_ra>
